<compile_context>
chip_gen: v7x
topology: tpu7x:2x2x1
jax: 0.10.0
libtpu: 0.0.40
codegen_flags: <defaults>
</compile_context>

<pallas_src>
import functools

import jax
import jax.numpy as jnp
from jax.experimental import pallas as pl
from jax.experimental.pallas import tpu as pltpu

_LANES = 128
_BLOCK_BYTES = 4 * 1024 * 1024  # ~4 MiB per input per pipeline buffer


def _quantum_loss_kernel(p_ref, t_ref, out_ref, acc_ref, *, op, block_rows,
                         total_rows, blocks_per_split, need_mask):
    """Streaming reduction.

    Grid = (num_splits, blocks_per_split).  acc_ref: (8, 128) f32 per-lane
    partial sums (per-core when the leading axis is sharded).  out_ref: the
    (8, 128) partial-sum block for this split.
    """
    c = pl.program_id(0)
    j = pl.program_id(1)
    last_j = pl.num_programs(1) - 1

    @pl.when(j == 0)
    def _init():
        acc_ref[...] = jnp.zeros_like(acc_ref)

    # Load native-dtype tiles; upcast to f32 in-register.
    p = p_ref[...].astype(jnp.float32)
    t = t_ref[...].astype(jnp.float32)

    # NOTE: 'fidelity' assumes nonnegative probability-like inputs
    # (sqrt of a negative product is NaN, matching the PyTorch reference).
    if op == "fidelity":
        vals = jnp.sqrt(p * t)
    else:
        vals = jnp.abs(p - t)

    if need_mask:
        # Mask rows past the true row count (clipped / clamped DMA leaves
        # garbage; fully out-of-range duplicate blocks mask to zero).  A
        # (block_rows, 1) row mask applied after the elementwise op is cheap:
        # where() selects 0.0 regardless of NaN/Inf in the garbage lanes.
        blk = c * blocks_per_split + j
        row = jax.lax.broadcasted_iota(jnp.int32, (block_rows, 1), 0)
        valid = (blk * block_rows + row) < total_rows
        vals = jnp.where(valid, vals, 0.0)

    # Fold the (block_rows, 128) tile into the (8, 128) accumulator with pure
    # VPU adds — no cross-lane reduction in the hot loop.
    acc_ref[...] += vals.reshape(block_rows // 8, 8, _LANES).sum(axis=0)

    @pl.when(j == last_j)
    def _finalize():
        out_ref[...] = acc_ref[...]


@functools.partial(jax.jit, static_argnames=("loss_type",))
def quantum_loss(predicted_state, target_state, loss_type="fidelity"):
    if loss_type not in ("fidelity", "trace_distance"):
        raise ValueError(f"Unsupported loss type: {loss_type}")

    p = jnp.ravel(predicted_state)
    t = jnp.ravel(target_state)
    # Keep native dtype for f32/bf16 (kernel upcasts in-register); cast any
    # other dtype to f32 in the wrapper.
    if p.dtype not in (jnp.float32, jnp.bfloat16):
        p = p.astype(jnp.float32)
    if t.dtype not in (jnp.float32, jnp.bfloat16):
        t = t.astype(jnp.float32)

    n = p.shape[0]
    any_bf16 = (p.dtype == jnp.bfloat16) or (t.dtype == jnp.bfloat16)
    sub = 16 if any_bf16 else 8
    itemsize = max(jnp.dtype(p.dtype).itemsize, jnp.dtype(t.dtype).itemsize)
    # Byte-sized block: constant DMA time per step regardless of dtype.
    max_block_rows = (_BLOCK_BYTES // (_LANES * itemsize)) // sub * sub

    def _elementwise(a, b):
        a = a.astype(jnp.float32)
        b = b.astype(jnp.float32)
        if loss_type == "fidelity":
            return jnp.sqrt(a * b)
        return jnp.abs(a - b)

    rows = n // _LANES
    n_main = rows * _LANES

    # Ragged <128-element tail: tiny jnp reduction in the wrapper instead of a
    # full-array pad copy (sum over an empty slice is 0.0 when aligned).
    tail_sum = jnp.sum(_elementwise(p[n_main:], t[n_main:]))

    if rows == 0:
        s = tail_sum
    else:
        block_rows = min(max_block_rows, ((rows + sub - 1) // sub) * sub)
        num_blocks = pl.cdiv(rows, block_rows)
        num_splits = 2 if num_blocks >= 2 else 1
        blocks_per_split = pl.cdiv(num_blocks, num_splits)
        # Mask only if some block is ragged / duplicated by the split.
        need_mask = (num_splits * blocks_per_split * block_rows) != rows

        p_main = p if n_main == n else p[:n_main]
        t_main = t if n_main == n else t[:n_main]
        p2d = p_main.reshape(rows, _LANES)
        t2d = t_main.reshape(rows, _LANES)

        kernel = functools.partial(
            _quantum_loss_kernel, op=loss_type, block_rows=block_rows,
            total_rows=rows, blocks_per_split=blocks_per_split,
            need_mask=need_mask)

        in_map = lambda c, j: (c * blocks_per_split + j, 0)  # noqa: E731
        out_map = lambda c, j: (c, 0)                        # noqa: E731

        partials = pl.pallas_call(
            kernel,
            out_shape=jax.ShapeDtypeStruct((num_splits * 8, _LANES),
                                           jnp.float32),
            grid_spec=pltpu.PrefetchScalarGridSpec(
                num_scalar_prefetch=0,
                grid=(num_splits, blocks_per_split),
                in_specs=[
                    pl.BlockSpec((block_rows, _LANES), in_map),
                    pl.BlockSpec((block_rows, _LANES), in_map),
                ],
                out_specs=pl.BlockSpec((8, _LANES), out_map),
                scratch_shapes=[pltpu.VMEM((8, _LANES), jnp.float32)],
            ),
            compiler_params=pltpu.CompilerParams(
                # Leading split axis is independent ("parallel", shardable
                # across TensorCores); the block axis is the reduction.
                dimension_semantics=("parallel", "arbitrary"),
                # 2 inputs x 2 buffers x ~4 MiB = 16 MiB of block buffers;
                # v5e's default scoped-VMEM limit is only 16 MiB, so raise it.
                vmem_limit_bytes=40 * 1024 * 1024,
            ),
        )(p2d, t2d)
        s = jnp.sum(partials) + tail_sum

    if loss_type == "fidelity":
        return jnp.float32(1.0) - jnp.abs(s) ** 2
    return s * jnp.float32(0.5)


def _reference(pred, targ, loss_type):
    if loss_type == "fidelity":
        return 1.0 - jnp.abs(jnp.sum(jnp.sqrt(pred * targ))) ** 2
    return jnp.sum(jnp.abs(pred - targ)) / 2.0


if __name__ == "__main__":
    key = jax.random.PRNGKey(0)
    keys = jax.random.split(key, 6)

    def _make(shape, k1, k2):
        pred = jax.random.uniform(k1, shape, dtype=jnp.float32)
        targ = jax.random.uniform(k2, shape, dtype=jnp.float32)
        return pred / jnp.sum(pred), targ / jnp.sum(targ)

    # 1) Small "quantum state" input: batch=2, channels=4, 16x16 (2048
    #    elements, 128-aligned, single-block path).
    pred, targ = _make((2, 4, 16, 16), keys[0], keys[1])
    fid = quantum_loss(pred, targ, loss_type="fidelity")
    td = quantum_loss(pred, targ, loss_type="trace_distance")
    jax.block_until_ready((fid, td))
    assert jnp.allclose(fid, _reference(pred, targ, "fidelity"),
                        atol=1e-5, rtol=1e-5), (fid,)
    assert jnp.allclose(td, _reference(pred, targ, "trace_distance"),
                        atol=1e-5, rtol=1e-5), (td,)

    # 2) Oddly-sized input: ragged last row block + <128-element tail, handled
    #    with in-kernel masking + wrapper tail sum (no pad copy).
    bpred, btarg = _make((2, 3, 211, 211), keys[2], keys[3])
    bfid = quantum_loss(bpred, btarg, loss_type="fidelity")
    btd = quantum_loss(bpred, btarg, loss_type="trace_distance")
    jax.block_until_ready((bfid, btd))
    assert jnp.allclose(bfid, _reference(bpred, btarg, "fidelity"),
                        atol=1e-4, rtol=1e-4), (bfid,)
    assert jnp.allclose(btd, _reference(bpred, btarg, "trace_distance"),
                        atol=1e-4, rtol=1e-4), (btd,)

    # 3) Moderate streaming input: exercises the multi-block grid and the
    #    2-way split ("parallel") axis plus masking of a duplicated block.
    cpred, ctarg = _make((2, 6, 331, 331), keys[4], keys[5])
    cfid = quantum_loss(cpred, ctarg, loss_type="fidelity")
    ctd = quantum_loss(cpred, ctarg, loss_type="trace_distance")
    jax.block_until_ready((cfid, ctd))
    assert jnp.allclose(cfid, _reference(cpred, ctarg, "fidelity"),
                        atol=1e-4, rtol=1e-4), (cfid,)
    assert jnp.allclose(ctd, _reference(cpred, ctarg, "trace_distance"),
                        atol=1e-4, rtol=1e-4), (ctd,)

    print("KERNEL_OK")
</pallas_src>

<mosaic_0001>
module attributes {stable_mosaic.version = 11 : i64} {
  func.func @_quantum_loss_kernel(%arg0: i32, %arg1: i32, %arg2: memref<16x128xf32, #tpu.memory_space<vmem>>, %arg3: memref<16x128xf32, #tpu.memory_space<vmem>>, %arg4: memref<8x128xf32, #tpu.memory_space<vmem>>, %arg5: memref<8x128xf32, #tpu.memory_space<vmem>>) attributes {dimension_semantics = [#tpu.dimension_semantics<parallel>, #tpu.dimension_semantics<arbitrary>], iteration_bounds = array<i64: 1, 1>, scalar_prefetch = 0 : i64, scratch_operands = 1 : i64, tpu.core_type = #tpu.core_type<tc>, window_params = [{transform_indices = @transform_0, window_bounds = array<i64: 16, 128>}, {transform_indices = @transform_1, window_bounds = array<i64: 16, 128>}, {transform_indices = @transform_2, window_bounds = array<i64: 8, 128>}]} {
    %c0_i32 = arith.constant 0 : i32
    %0 = arith.cmpi eq, %arg1, %c0_i32 : i32
    %1 = arith.extui %0 : i1 to i32
    %c0_i32_0 = arith.constant 0 : i32
    %2 = arith.cmpi ne, %1, %c0_i32_0 : i32
    scf.if %2 {
      %cst_10 = arith.constant 0.000000e+00 : f32
      %15 = vector.broadcast %cst_10 : f32 to vector<8x128xf32>
      %c0_11 = arith.constant 0 : index
      %c0_12 = arith.constant 0 : index
      %16 = vector.load %arg5[%c0_11, %c0_12] : memref<8x128xf32, #tpu.memory_space<vmem>>, vector<8x128xf32>
      tpu.vector_store %arg5[%c0_11, %c0_12], %15 {strides = array<i32>} : memref<8x128xf32, #tpu.memory_space<vmem>>, vector<8x128xf32>,
    } else {
    }
    %c0 = arith.constant 0 : index
    %c0_1 = arith.constant 0 : index
    %3 = vector.load %arg2[%c0, %c0_1] : memref<16x128xf32, #tpu.memory_space<vmem>>, vector<16x128xf32>
    %c0_2 = arith.constant 0 : index
    %c0_3 = arith.constant 0 : index
    %4 = vector.load %arg3[%c0_2, %c0_3] : memref<16x128xf32, #tpu.memory_space<vmem>>, vector<16x128xf32>
    %5 = arith.mulf %3, %4 : vector<16x128xf32>
    %6 = math.sqrt %5 : vector<16x128xf32>
    %c0_4 = arith.constant 0 : index
    %c0_5 = arith.constant 0 : index
    %7 = vector.load %arg5[%c0_4, %c0_5] : memref<8x128xf32, #tpu.memory_space<vmem>>, vector<8x128xf32>
    %8 = vector.shape_cast %6 : vector<16x128xf32> to vector<2x8x128xf32>
    %cst = arith.constant dense<0.000000e+00> : vector<8x128xf32>
    %9 = vector.multi_reduction <add>, %8, %cst [0] : vector<2x8x128xf32> to vector<8x128xf32>
    %10 = arith.addf %7, %9 : vector<8x128xf32>
    %c0_6 = arith.constant 0 : index
    %c0_7 = arith.constant 0 : index
    %11 = vector.load %arg5[%c0_6, %c0_7] : memref<8x128xf32, #tpu.memory_space<vmem>>, vector<8x128xf32>
    tpu.vector_store %arg5[%c0_6, %c0_7], %10 {strides = array<i32>} : memref<8x128xf32, #tpu.memory_space<vmem>>, vector<8x128xf32>,
    %c0_i32_8 = arith.constant 0 : i32
    %12 = arith.cmpi eq, %arg1, %c0_i32_8 : i32
    %13 = arith.extui %12 : i1 to i32
    %c0_i32_9 = arith.constant 0 : i32
    %14 = arith.cmpi ne, %13, %c0_i32_9 : i32
    scf.if %14 {
      %c0_10 = arith.constant 0 : index
      %c0_11 = arith.constant 0 : index
      %15 = vector.load %arg5[%c0_10, %c0_11] : memref<8x128xf32, #tpu.memory_space<vmem>>, vector<8x128xf32>
      %c0_12 = arith.constant 0 : index
      %c0_13 = arith.constant 0 : index
      %16 = vector.load %arg4[%c0_12, %c0_13] : memref<8x128xf32, #tpu.memory_space<vmem>>, vector<8x128xf32>
      tpu.vector_store %arg4[%c0_12, %c0_13], %15 {strides = array<i32>} : memref<8x128xf32, #tpu.memory_space<vmem>>, vector<8x128xf32>,
    } else {
    }
    return
  }
  func.func @transform_0(%arg0: i32, %arg1: i32) -> (i32, i32) {
    %c1_i32 = arith.constant 1 : i32
    %0 = arith.muli %arg0, %c1_i32 : i32
    %1 = arith.addi %0, %arg1 : i32
    %c0_i32 = arith.constant 0 : i32
    %c0_i32_0 = arith.constant 0 : i32
    return %1, %c0_i32 : i32, i32
  }
  func.func @transform_1(%arg0: i32, %arg1: i32) -> (i32, i32) {
    %c1_i32 = arith.constant 1 : i32
    %0 = arith.muli %arg0, %c1_i32 : i32
    %1 = arith.addi %0, %arg1 : i32
    %c0_i32 = arith.constant 0 : i32
    %c0_i32_0 = arith.constant 0 : i32
    return %1, %c0_i32 : i32, i32
  }
  func.func @transform_2(%arg0: i32, %arg1: i32) -> (i32, i32) {
    %c0_i32 = arith.constant 0 : i32
    %c0_i32_0 = arith.constant 0 : i32
    return %arg0, %c0_i32 : i32, i32
  }
}

</mosaic_0001>

<bundles_post_ra>
// kernel: quantum_loss.1
= control target key start
LH: loop header
LB: loop body
LE: loop exit
PB: predicated region body
PF: predicated region fallthrough
CT: control target
= control target key end

     0   :  { %s139_s0 = inlined_call_operand.vmem [shape: f32[16,128], index: 0, kind: input, shape index: {}]   ;;  %s140_s1 = inlined_call_operand.vmem [shape: f32[16,128], index: 1, kind: input, shape index: {}]   ;;  %s141_s2 = inlined_call_operand.vmem [shape: f32[8,128], index: 2, kind: output, shape index: {}]  }
   0x1   :  { %v60_v0 = vld [vmem:[%s139_s0] sm:$0xff]  ;;  %v61_v1 = vld [vmem:[%s139_s0 + $0x8] sm:$0xff] }
   0x2   :  { %v62_v2 = vld [vmem:[%s140_s1] sm:$0xff]  ;;  %v63_v3 = vld [vmem:[%s140_s1 + $0x8] sm:$0xff] }
   0x3   :  { %v64_v4 = vmul.f32 %v62_v2, %v60_v0  ;;  %v65_v5 = vmul.f32 %v63_v3, %v61_v1 }
   0x5   :  { %105 = vrsqrt.f32 %v64_v4  ;;  %vm68_vm0 = vcmp.eq.f32.partialorder %v64_v4, inf  ;;  %v71_v7 = vand.u32 2147483648, %v64_v4  ;;  %vm70_vm1 = vcmp.eq.f32.partialorder %v64_v4, 0.0 }
   0x6   :  { %107 = vrsqrt.f32 %v65_v5  ;;  %vm75_vm2 = vcmp.eq.f32.partialorder %v65_v5, inf  ;;  %v78_v10 = vand.u32 2147483648, %v65_v5  ;;  %vm77_vm3 = vcmp.eq.f32.partialorder %v65_v5, 0.0 }
   0xf   :  { %v106_v6 = vpop.eup %105 }
  0x10   :  { %v108_v8 = vpop.eup %107  ;;  %v67_v9 = vmul.f32 %v106_v6, %v64_v4 }
  0x11   :  { %v74_v11 = vmul.f32 %v108_v8, %v65_v5 }
  0x12   :  { %v69_v12 = vsel %vm68_vm0, %v64_v4, %v67_v9 }
  0x13   :  { %v72_v13 = vsel %vm70_vm1, %v71_v7, %v69_v12  ;;  %v76_v14 = vsel %vm75_vm2, %v65_v5, %v74_v11 }
  0x14   :  { %v79_v15 = vsel %vm77_vm3, %v78_v10, %v76_v14 }
  0x15   :  { %v81_v16 = vadd.f32 %v79_v15, %v72_v13 }
  0x17   :  { %88 = vst [vmem:[%s141_s2] sm:$0xff] %v81_v16 }

</bundles_post_ra>
